<compile_context>
chip_gen: v7x
topology: tpu7x:2x2x1
jax: 0.10.0
libtpu: 0.0.40
codegen_flags: <defaults>
</compile_context>

<pallas_src>
import functools

import jax
import jax.numpy as jnp
from jax.experimental import pallas as pl
from jax.experimental.pallas import tpu as pltpu


# --------------------------------------------------------------------------
# Kernel
# --------------------------------------------------------------------------
def _vaegan_kernel(
    # batch-tiled inputs
    x_ref, eps_ref,
    # encoder
    we1, be1, we2, be2, wh, bh,
    # decoder
    wd1, bd1, wd2, bd2, wd3, bd3,
    # discriminator
    wg1, bg1, wg2, bg2, wg3, bg3,
    # outputs
    recon_ref, head_ref,
    *, input_dim, latent_dim,
):
    f32, bf16 = jnp.float32, jnp.bfloat16

    def linear(h_bf16, w_ref, b_ref):
        # bf16 MXU operands, f32 accumulation, f32 bias add on VPU.
        return jnp.dot(h_bf16, w_ref[...], preferred_element_type=f32) + b_ref[...]

    relu = lambda h: jnp.maximum(h, 0.0)
    lrelu = lambda h: jnp.where(h >= 0.0, h, 0.2 * h)   # LeakyReLU(0.2) per spec

    # ---- Encoder: Linear(in,128)+ReLU -> Linear(128,64)+ReLU -> fused head
    x = x_ref[...]                                     # bf16 (TM, in_p)
    h1 = relu(linear(x, we1, be1))                     # (TM, 128) f32
    h2 = relu(linear(h1.astype(bf16), we2, be2))       # (TM, 64)  f32
    head = linear(h2.astype(bf16), wh, bh)             # (TM, 128): [mu | logvar | 0]
    head_ref[...] = head.astype(head_ref.dtype)        # store early (lane-dense bf16)

    # ---- Reparameterize + decoder L1, fused via linearity (no lane shifts):
    #   z @ Wd1 = mu @ Wd1 + (eps*std) @ Wd1
    # eps arrives pre-shifted to lanes [lat:2lat] so it lines up with logvar,
    # and wd1 carries the real decoder weight duplicated in rows 0:lat and
    # lat:2lat (zeros elsewhere).
    lane = jax.lax.broadcasted_iota(jnp.int32, head.shape, 1)
    is_mu = lane < latent_dim
    std = jnp.exp(0.5 * jnp.where(is_mu, 0.0, head))   # exp(0.5*logvar) on logvar lanes
    u = jnp.where(is_mu, head, 0.0) + eps_ref[...].astype(f32) * std   # [mu | eps*std | 0]

    d1 = relu(linear(u.astype(bf16), wd1, bd1))        # (TM, 64)
    d2 = relu(linear(d1.astype(bf16), wd2, bd2))       # (TM, 128)
    recon = linear(d2.astype(bf16), wd3, bd3)          # (TM, in_p) f32; lanes >= in_dim are 0

    # ---- Discriminator: Linear(in,128)+LReLU -> Linear(128,64)+LReLU
    #                     -> (64,1) head as VPU mul + lane reduce -> Sigmoid
    g1 = lrelu(linear(recon.astype(bf16), wg1, bg1))   # (TM, 128)
    g2 = lrelu(linear(g1.astype(bf16), wg2, bg2))      # (TM, 64)
    logit = jnp.sum(g2 * wg3[...], axis=-1, keepdims=True) + bg3[...]   # (TM, 1)
    # numerically stable sigmoid: exp argument is always <= 0, never overflows
    e = jnp.exp(-jnp.abs(logit))
    inv = pl.reciprocal(1.0 + e, approx=True)
    disc = jnp.where(logit >= 0.0, inv, e * inv)       # (TM, 1)

    # pack disc into recon's first padded lane; HBM store stays lane-dense bf16
    rlane = jax.lax.broadcasted_iota(jnp.int32, recon.shape, 1)
    recon_out = jnp.where(rlane == input_dim, disc, recon)
    recon_ref[...] = recon_out.astype(recon_ref.dtype)


# --------------------------------------------------------------------------
# Parameter construction (mirrors torch.nn.Linear init, weights pre-transposed)
# --------------------------------------------------------------------------
def init_linear_params(key, in_dim, out_dim, dtype=jnp.float32):
    kw, kb = jax.random.split(key)
    bound = 1.0 / jnp.sqrt(jnp.asarray(in_dim, dtype))
    w = jax.random.uniform(kw, (in_dim, out_dim), dtype, -bound, bound)
    b = jax.random.uniform(kb, (1, out_dim), dtype, -bound, bound)
    return w, b


def make_vaegan_params(key, input_dim, latent_dim):
    keys = jax.random.split(key, 10)
    p = {}
    # Encoder
    p["we1"], p["be1"] = init_linear_params(keys[0], input_dim, 128)
    p["we2"], p["be2"] = init_linear_params(keys[1], 128, 64)
    p["wmu"], p["bmu"] = init_linear_params(keys[2], 64, latent_dim)
    p["wlv"], p["blv"] = init_linear_params(keys[3], 64, latent_dim)
    # Decoder
    p["wd1"], p["bd1"] = init_linear_params(keys[4], latent_dim, 64)
    p["wd2"], p["bd2"] = init_linear_params(keys[5], 64, 128)
    p["wd3"], p["bd3"] = init_linear_params(keys[6], 128, input_dim)
    # Discriminator
    p["wg1"], p["bg1"] = init_linear_params(keys[7], input_dim, 128)
    p["wg2"], p["bg2"] = init_linear_params(keys[8], 128, 64)
    p["wg3"], p["bg3"] = init_linear_params(keys[9], 64, 1)
    return p


def _round_up(v, m):
    return ((v + m - 1) // m) * m


def _pad2(a, rows, cols):
    return jnp.pad(a, ((0, rows - a.shape[0]), (0, cols - a.shape[1])))


def pack_vaegan_params(params, input_dim, latent_dim):
    """Pad feature dims to 128, fuse mu|logvar head into one 128-wide matmul,
    duplicate wd1 rows for the fused reparameterize+decoder trick, cast MXU
    operands to bf16."""
    in_p = _round_up(input_dim, 128)
    head_cols = _round_up(2 * latent_dim, 128)
    bf16, f32 = jnp.bfloat16, jnp.float32

    we1 = _pad2(params["we1"], in_p, 128).astype(bf16)
    be1 = params["be1"].astype(f32)
    we2 = params["we2"].astype(bf16)
    be2 = params["be2"].astype(f32)

    # fused head: mu weights in cols 0:lat, logvar weights in cols lat:2lat
    wh = jnp.zeros((64, head_cols), f32)
    wh = wh.at[:, :latent_dim].set(params["wmu"])
    wh = wh.at[:, latent_dim:2 * latent_dim].set(params["wlv"])
    wh = wh.astype(bf16)
    bh = jnp.zeros((1, head_cols), f32)
    bh = bh.at[:, :latent_dim].set(params["bmu"])
    bh = bh.at[:, latent_dim:2 * latent_dim].set(params["blv"])

    # decoder L1 weight duplicated: rows 0:lat act on mu, rows lat:2lat on eps*std
    wd1 = jnp.zeros((head_cols, 64), f32)
    wd1 = wd1.at[:latent_dim].set(params["wd1"])
    wd1 = wd1.at[latent_dim:2 * latent_dim].set(params["wd1"])
    wd1 = wd1.astype(bf16)
    bd1 = params["bd1"].astype(f32)
    wd2 = params["wd2"].astype(bf16)
    bd2 = params["bd2"].astype(f32)
    wd3 = _pad2(params["wd3"], 128, in_p).astype(bf16)
    bd3 = _pad2(params["bd3"], 1, in_p).astype(f32)

    wg1 = _pad2(params["wg1"], in_p, 128).astype(bf16)
    bg1 = params["bg1"].astype(f32)
    wg2 = params["wg2"].astype(bf16)
    bg2 = params["bg2"].astype(f32)
    wg3 = params["wg3"].T.astype(f32)          # (1, 64) row, stays f32 (VPU path)
    bg3 = params["bg3"].astype(f32)            # (1, 1)

    return [we1, be1, we2, be2, wh, bh,
            wd1, bd1, wd2, bd2, wd3, bd3,
            wg1, bg1, wg2, bg2, wg3, bg3]


# --------------------------------------------------------------------------
# Wrapper
# --------------------------------------------------------------------------
@functools.partial(jax.jit, static_argnames=("input_dim", "latent_dim"))
def vaegan_forward(x, eps, packed_params, *, input_dim, latent_dim):
    batch = x.shape[0]
    in_p = _round_up(input_dim, 128)
    head_cols = _round_up(2 * latent_dim, 128)
    # TODO(synk): if input_dim is an exact multiple of 128 there is no spare
    # padded lane for the packed disc scalar — fall back to a separate output.
    assert input_dim < in_p, "disc packing needs a spare padded lane in recon"

    # Row tile: multiple of 8, large (amortize ~0.35us/grid-step), capped at 1024
    # (v5e scoped-VMEM friendly) and sized for >=2 grid steps when the batch
    # allows so v7x's two TensorCores both get work.
    tm = max(8, min(1024, _round_up((batch + 1) // 2, 8)))
    b_pad = _round_up(batch, tm)

    bf16 = jnp.bfloat16
    x_p = jnp.pad(x.astype(bf16), ((0, b_pad - batch), (0, in_p - input_dim)))
    # eps lives in lanes [lat : 2*lat] so it lines up with logvar/std in-kernel.
    eps_p = jnp.pad(eps.astype(bf16),
                    ((0, b_pad - batch), (latent_dim, head_cols - 2 * latent_dim)))

    row_map = lambda i: (i, 0)
    const_map = lambda i: (0, 0)   # weights stay VMEM-resident across grid steps

    in_specs = [
        pl.BlockSpec((tm, in_p), row_map),
        pl.BlockSpec((tm, head_cols), row_map),
    ] + [pl.BlockSpec(p.shape, const_map) for p in packed_params]

    out_specs = (
        pl.BlockSpec((tm, in_p), row_map),        # recon (disc packed at lane input_dim)
        pl.BlockSpec((tm, head_cols), row_map),   # head  (mu | logvar)
    )
    out_shape = (
        jax.ShapeDtypeStruct((b_pad, in_p), bf16),
        jax.ShapeDtypeStruct((b_pad, head_cols), bf16),
    )

    # Advisory cost + explicit VMEM budget (footprint is a few MiB; keep an
    # explicit window that is safe on v5e's 16 MiB default and v7x's 64 MiB phys).
    weight_bytes = sum(int(p.size) * p.dtype.itemsize for p in packed_params)
    io_bytes = b_pad * 2 * (in_p + head_cols) * 2 + weight_bytes      # bf16 streams
    flops_row = 2 * (input_dim * 128 + 128 * 64 + 64 * 2 * latent_dim
                     + 2 * latent_dim * 64 + 64 * 128 + 128 * input_dim
                     + input_dim * 128 + 128 * 64 + 64)
    cost = pl.CostEstimate(flops=flops_row * batch,
                           transcendentals=batch * (head_cols + 2),
                           bytes_accessed=io_bytes)
    footprint = (2 * weight_bytes
                 + 4 * tm * (in_p + head_cols) * 2     # double-buffered bf16 I/O tiles
                 + 12 * tm * 128 * 4)                  # f32 intermediates (generous)
    vmem_limit = int(min(max(footprint, 16 << 20), 32 << 20))

    kernel = functools.partial(_vaegan_kernel,
                               input_dim=input_dim, latent_dim=latent_dim)

    recon_pad, head_pad = pl.pallas_call(
        kernel,
        out_shape=out_shape,
        grid=(b_pad // tm,),
        in_specs=in_specs,
        out_specs=out_specs,
        compiler_params=pltpu.CompilerParams(
            dimension_semantics=("parallel",),   # shard batch over TCs (v7x megacore)
            vmem_limit_bytes=vmem_limit,
        ),
        cost_estimate=cost,
    )(x_p, eps_p, *packed_params)

    f32 = jnp.float32
    recon = recon_pad[:batch, :input_dim].astype(f32)
    disc = recon_pad[:batch, input_dim:input_dim + 1].astype(f32)
    mu = head_pad[:batch, :latent_dim].astype(f32)
    logvar = head_pad[:batch, latent_dim:2 * latent_dim].astype(f32)
    return recon, mu, logvar, disc


# --------------------------------------------------------------------------
# Pure-JAX reference (mimics bf16 MXU operands, f32 elementwise)
# --------------------------------------------------------------------------
def vaegan_reference(x, eps, params):
    bf16, f32 = jnp.bfloat16, jnp.float32

    def lin(h, w, b):
        return jnp.dot(h.astype(bf16), w.astype(bf16),
                       preferred_element_type=f32) + b

    relu = lambda h: jnp.maximum(h, 0.0)
    lrelu = lambda h: jnp.where(h >= 0.0, h, 0.2 * h)

    h = relu(lin(x, params["we1"], params["be1"]))
    h = relu(lin(h, params["we2"], params["be2"]))
    mu = lin(h, params["wmu"], params["bmu"])
    logvar = lin(h, params["wlv"], params["blv"])
    z = mu + eps * jnp.exp(0.5 * logvar)
    d = relu(lin(z, params["wd1"], params["bd1"]))
    d = relu(lin(d, params["wd2"], params["bd2"]))
    recon = lin(d, params["wd3"], params["bd3"])
    g = lrelu(lin(recon, params["wg1"], params["bg1"]))
    g = lrelu(lin(g, params["wg2"], params["bg2"]))
    logit = jnp.sum(g * params["wg3"].T, axis=-1, keepdims=True) + params["bg3"]
    disc = jax.nn.sigmoid(logit)
    return recon, mu, logvar, disc


# --------------------------------------------------------------------------
if __name__ == "__main__":
    INPUT_DIM = 32
    LATENT_DIM = 8
    BATCH = 8

    root = jax.random.PRNGKey(0)
    k_params, k_x, k_eps = jax.random.split(root, 3)

    params = make_vaegan_params(k_params, INPUT_DIM, LATENT_DIM)
    packed = pack_vaegan_params(params, INPUT_DIM, LATENT_DIM)

    x = jax.random.normal(k_x, (BATCH, INPUT_DIM), jnp.float32)
    # torch.randn_like(std) in reparameterize -> deterministic eps drawn here.
    # bf16-rounded so kernel and reference consume bit-identical noise.
    eps = jax.random.normal(k_eps, (BATCH, LATENT_DIM), jnp.float32)
    eps = eps.astype(jnp.bfloat16).astype(jnp.float32)

    recon_x, mu, logvar, disc_out = vaegan_forward(
        x, eps, packed, input_dim=INPUT_DIM, latent_dim=LATENT_DIM
    )
    jax.block_until_ready((recon_x, mu, logvar, disc_out))

    # sanity-check against pure-JAX reference (bf16 matmuls, bf16 outputs and
    # approx-reciprocal sigmoid shift results; tolerance loosened accordingly)
    r_ref, mu_ref, lv_ref, d_ref = vaegan_reference(x, eps, params)
    assert recon_x.shape == (BATCH, INPUT_DIM)
    assert mu.shape == (BATCH, LATENT_DIM)
    assert logvar.shape == (BATCH, LATENT_DIM)
    assert disc_out.shape == (BATCH, 1)
    assert jnp.allclose(recon_x, r_ref, atol=3e-2, rtol=3e-2)
    assert jnp.allclose(mu, mu_ref, atol=3e-2, rtol=3e-2)
    assert jnp.allclose(logvar, lv_ref, atol=3e-2, rtol=3e-2)
    assert jnp.allclose(disc_out, d_ref, atol=3e-2, rtol=3e-2)

    print("KERNEL_OK")
</pallas_src>

<mosaic_0001>
module attributes {stable_mosaic.version = 11 : i64} {
  func.func @_vaegan_kernel(%arg0: i32, %arg1: memref<8x128xbf16, #tpu.memory_space<vmem>>, %arg2: memref<8x128xbf16, #tpu.memory_space<vmem>>, %arg3: memref<128x128xbf16, #tpu.memory_space<vmem>>, %arg4: memref<1x128xf32, #tpu.memory_space<vmem>>, %arg5: memref<128x64xbf16, #tpu.memory_space<vmem>>, %arg6: memref<1x64xf32, #tpu.memory_space<vmem>>, %arg7: memref<64x128xbf16, #tpu.memory_space<vmem>>, %arg8: memref<1x128xf32, #tpu.memory_space<vmem>>, %arg9: memref<128x64xbf16, #tpu.memory_space<vmem>>, %arg10: memref<1x64xf32, #tpu.memory_space<vmem>>, %arg11: memref<64x128xbf16, #tpu.memory_space<vmem>>, %arg12: memref<1x128xf32, #tpu.memory_space<vmem>>, %arg13: memref<128x128xbf16, #tpu.memory_space<vmem>>, %arg14: memref<1x128xf32, #tpu.memory_space<vmem>>, %arg15: memref<128x128xbf16, #tpu.memory_space<vmem>>, %arg16: memref<1x128xf32, #tpu.memory_space<vmem>>, %arg17: memref<128x64xbf16, #tpu.memory_space<vmem>>, %arg18: memref<1x64xf32, #tpu.memory_space<vmem>>, %arg19: memref<1x64xf32, #tpu.memory_space<vmem>>, %arg20: memref<1x1xf32, #tpu.memory_space<vmem>>, %arg21: memref<8x128xbf16, #tpu.memory_space<vmem>>, %arg22: memref<8x128xbf16, #tpu.memory_space<vmem>>) attributes {dimension_semantics = [#tpu.dimension_semantics<parallel>], iteration_bounds = array<i64: 1>, scalar_prefetch = 0 : i64, scratch_operands = 0 : i64, tpu.core_type = #tpu.core_type<tc>, window_params = [{transform_indices = @transform_0, window_bounds = array<i64: 8, 128>}, {transform_indices = @transform_1, window_bounds = array<i64: 8, 128>}, {pipeline_mode = #tpu.pipeline_mode<synchronous>, transform_indices = @transform_2, window_bounds = array<i64: 128, 128>}, {pipeline_mode = #tpu.pipeline_mode<synchronous>, transform_indices = @transform_3, window_bounds = array<i64: 1, 128>}, {pipeline_mode = #tpu.pipeline_mode<synchronous>, transform_indices = @transform_4, window_bounds = array<i64: 128, 64>}, {pipeline_mode = #tpu.pipeline_mode<synchronous>, transform_indices = @transform_5, window_bounds = array<i64: 1, 64>}, {pipeline_mode = #tpu.pipeline_mode<synchronous>, transform_indices = @transform_6, window_bounds = array<i64: 64, 128>}, {pipeline_mode = #tpu.pipeline_mode<synchronous>, transform_indices = @transform_7, window_bounds = array<i64: 1, 128>}, {pipeline_mode = #tpu.pipeline_mode<synchronous>, transform_indices = @transform_8, window_bounds = array<i64: 128, 64>}, {pipeline_mode = #tpu.pipeline_mode<synchronous>, transform_indices = @transform_9, window_bounds = array<i64: 1, 64>}, {pipeline_mode = #tpu.pipeline_mode<synchronous>, transform_indices = @transform_10, window_bounds = array<i64: 64, 128>}, {pipeline_mode = #tpu.pipeline_mode<synchronous>, transform_indices = @transform_11, window_bounds = array<i64: 1, 128>}, {pipeline_mode = #tpu.pipeline_mode<synchronous>, transform_indices = @transform_12, window_bounds = array<i64: 128, 128>}, {pipeline_mode = #tpu.pipeline_mode<synchronous>, transform_indices = @transform_13, window_bounds = array<i64: 1, 128>}, {pipeline_mode = #tpu.pipeline_mode<synchronous>, transform_indices = @transform_14, window_bounds = array<i64: 128, 128>}, {pipeline_mode = #tpu.pipeline_mode<synchronous>, transform_indices = @transform_15, window_bounds = array<i64: 1, 128>}, {pipeline_mode = #tpu.pipeline_mode<synchronous>, transform_indices = @transform_16, window_bounds = array<i64: 128, 64>}, {pipeline_mode = #tpu.pipeline_mode<synchronous>, transform_indices = @transform_17, window_bounds = array<i64: 1, 64>}, {pipeline_mode = #tpu.pipeline_mode<synchronous>, transform_indices = @transform_18, window_bounds = array<i64: 1, 64>}, {pipeline_mode = #tpu.pipeline_mode<synchronous>, transform_indices = @transform_19, window_bounds = array<i64: 1, 1>}, {transform_indices = @transform_20, window_bounds = array<i64: 8, 128>}, {transform_indices = @transform_21, window_bounds = array<i64: 8, 128>}]} {
    %c0 = arith.constant 0 : index
    %c0_0 = arith.constant 0 : index
    %0 = vector.load %arg1[%c0, %c0_0] : memref<8x128xbf16, #tpu.memory_space<vmem>>, vector<8x128xbf16>
    %c0_1 = arith.constant 0 : index
    %c0_2 = arith.constant 0 : index
    %1 = vector.load %arg3[%c0_1, %c0_2] : memref<128x128xbf16, #tpu.memory_space<vmem>>, vector<128x128xbf16>
    %cst = arith.constant dense<0.000000e+00> : vector<8x128xf32>
    %2 = tpu.matmul %0, %1, %cst {dimension_numbers = #tpu.dot_dimension_numbers<[1], [0], [0], [1], [0, 0, 1, 1], [], []>} : vector<8x128xbf16>, vector<128x128xbf16>, vector<8x128xf32> -> vector<8x128xf32>
    %c0_3 = arith.constant 0 : index
    %c0_4 = arith.constant 0 : index
    %3 = vector.load %arg4[%c0_3, %c0_4] : memref<1x128xf32, #tpu.memory_space<vmem>>, vector<1x128xf32>
    %4 = vector.broadcast %3 : vector<1x128xf32> to vector<8x128xf32>
    %5 = arith.addf %2, %4 : vector<8x128xf32>
    %cst_5 = arith.constant 0.000000e+00 : f32
    %6 = vector.broadcast %cst_5 : f32 to vector<8x128xf32>
    %7 = arith.maximumf %5, %6 : vector<8x128xf32>
    %8 = arith.truncf %7 : vector<8x128xf32> to vector<8x128xbf16>
    %c0_6 = arith.constant 0 : index
    %c0_7 = arith.constant 0 : index
    %9 = vector.load %arg5[%c0_6, %c0_7] : memref<128x64xbf16, #tpu.memory_space<vmem>>, vector<128x64xbf16>
    %cst_8 = arith.constant dense<0.000000e+00> : vector<8x64xf32>
    %10 = tpu.matmul %8, %9, %cst_8 {dimension_numbers = #tpu.dot_dimension_numbers<[1], [0], [0], [1], [0, 0, 1, 1], [], []>} : vector<8x128xbf16>, vector<128x64xbf16>, vector<8x64xf32> -> vector<8x64xf32>
    %c0_9 = arith.constant 0 : index
    %c0_10 = arith.constant 0 : index
    %11 = vector.load %arg6[%c0_9, %c0_10] : memref<1x64xf32, #tpu.memory_space<vmem>>, vector<1x64xf32>
    %12 = vector.broadcast %11 : vector<1x64xf32> to vector<8x64xf32>
    %13 = arith.addf %10, %12 : vector<8x64xf32>
    %cst_11 = arith.constant 0.000000e+00 : f32
    %14 = vector.broadcast %cst_11 : f32 to vector<8x64xf32>
    %15 = arith.maximumf %13, %14 : vector<8x64xf32>
    %16 = arith.truncf %15 : vector<8x64xf32> to vector<8x64xbf16>
    %c0_12 = arith.constant 0 : index
    %c0_13 = arith.constant 0 : index
    %17 = vector.load %arg7[%c0_12, %c0_13] : memref<64x128xbf16, #tpu.memory_space<vmem>>, vector<64x128xbf16>
    %cst_14 = arith.constant dense<0.000000e+00> : vector<8x128xf32>
    %18 = tpu.matmul %16, %17, %cst_14 {dimension_numbers = #tpu.dot_dimension_numbers<[1], [0], [0], [1], [0, 0, 1, 1], [], []>} : vector<8x64xbf16>, vector<64x128xbf16>, vector<8x128xf32> -> vector<8x128xf32>
    %c0_15 = arith.constant 0 : index
    %c0_16 = arith.constant 0 : index
    %19 = vector.load %arg8[%c0_15, %c0_16] : memref<1x128xf32, #tpu.memory_space<vmem>>, vector<1x128xf32>
    %20 = vector.broadcast %19 : vector<1x128xf32> to vector<8x128xf32>
    %21 = arith.addf %18, %20 : vector<8x128xf32>
    %22 = arith.truncf %21 : vector<8x128xf32> to vector<8x128xbf16>
    %c0_17 = arith.constant 0 : index
    %c0_18 = arith.constant 0 : index
    %23 = vector.load %arg22[%c0_17, %c0_18] : memref<8x128xbf16, #tpu.memory_space<vmem>>, vector<8x128xbf16>
    tpu.vector_store %arg22[%c0_17, %c0_18], %22 {strides = array<i32>} : memref<8x128xbf16, #tpu.memory_space<vmem>>, vector<8x128xbf16>,
    %24 = tpu.iota {dimensions = array<i32: 1>} : vector<8x128xi32>
    %c8_i32 = arith.constant 8 : i32
    %25 = vector.broadcast %c8_i32 : i32 to vector<8x128xi32>
    %26 = arith.cmpi slt, %24, %25 : vector<8x128xi32>
    %cst_19 = arith.constant 0.000000e+00 : f32
    %27 = vector.broadcast %cst_19 : f32 to vector<8x128xf32>
    %28 = arith.select %26, %27, %21 : vector<8x128xi1>, vector<8x128xf32>
    %cst_20 = arith.constant 5.000000e-01 : f32
    %29 = vector.broadcast %cst_20 : f32 to vector<8x128xf32>
    %30 = arith.mulf %29, %28 : vector<8x128xf32>
    %31 = math.exp %30 : vector<8x128xf32>
    %cst_21 = arith.constant 0.000000e+00 : f32
    %32 = vector.broadcast %cst_21 : f32 to vector<8x128xf32>
    %33 = arith.select %26, %21, %32 : vector<8x128xi1>, vector<8x128xf32>
    %c0_22 = arith.constant 0 : index
    %c0_23 = arith.constant 0 : index
    %34 = vector.load %arg2[%c0_22, %c0_23] : memref<8x128xbf16, #tpu.memory_space<vmem>>, vector<8x128xbf16>
    %35 = arith.extf %34 : vector<8x128xbf16> to vector<8x128xf32>
    %36 = arith.mulf %35, %31 : vector<8x128xf32>
    %37 = arith.addf %33, %36 : vector<8x128xf32>
    %38 = arith.truncf %37 : vector<8x128xf32> to vector<8x128xbf16>
    %c0_24 = arith.constant 0 : index
    %c0_25 = arith.constant 0 : index
    %39 = vector.load %arg9[%c0_24, %c0_25] : memref<128x64xbf16, #tpu.memory_space<vmem>>, vector<128x64xbf16>
    %cst_26 = arith.constant dense<0.000000e+00> : vector<8x64xf32>
    %40 = tpu.matmul %38, %39, %cst_26 {dimension_numbers = #tpu.dot_dimension_numbers<[1], [0], [0], [1], [0, 0, 1, 1], [], []>} : vector<8x128xbf16>, vector<128x64xbf16>, vector<8x64xf32> -> vector<8x64xf32>
    %c0_27 = arith.constant 0 : index
    %c0_28 = arith.constant 0 : index
    %41 = vector.load %arg10[%c0_27, %c0_28] : memref<1x64xf32, #tpu.memory_space<vmem>>, vector<1x64xf32>
    %42 = vector.broadcast %41 : vector<1x64xf32> to vector<8x64xf32>
    %43 = arith.addf %40, %42 : vector<8x64xf32>
    %cst_29 = arith.constant 0.000000e+00 : f32
    %44 = vector.broadcast %cst_29 : f32 to vector<8x64xf32>
    %45 = arith.maximumf %43, %44 : vector<8x64xf32>
    %46 = arith.truncf %45 : vector<8x64xf32> to vector<8x64xbf16>
    %c0_30 = arith.constant 0 : index
    %c0_31 = arith.constant 0 : index
    %47 = vector.load %arg11[%c0_30, %c0_31] : memref<64x128xbf16, #tpu.memory_space<vmem>>, vector<64x128xbf16>
    %cst_32 = arith.constant dense<0.000000e+00> : vector<8x128xf32>
    %48 = tpu.matmul %46, %47, %cst_32 {dimension_numbers = #tpu.dot_dimension_numbers<[1], [0], [0], [1], [0, 0, 1, 1], [], []>} : vector<8x64xbf16>, vector<64x128xbf16>, vector<8x128xf32> -> vector<8x128xf32>
    %c0_33 = arith.constant 0 : index
    %c0_34 = arith.constant 0 : index
    %49 = vector.load %arg12[%c0_33, %c0_34] : memref<1x128xf32, #tpu.memory_space<vmem>>, vector<1x128xf32>
    %50 = vector.broadcast %49 : vector<1x128xf32> to vector<8x128xf32>
    %51 = arith.addf %48, %50 : vector<8x128xf32>
    %cst_35 = arith.constant 0.000000e+00 : f32
    %52 = vector.broadcast %cst_35 : f32 to vector<8x128xf32>
    %53 = arith.maximumf %51, %52 : vector<8x128xf32>
    %54 = arith.truncf %53 : vector<8x128xf32> to vector<8x128xbf16>
    %c0_36 = arith.constant 0 : index
    %c0_37 = arith.constant 0 : index
    %55 = vector.load %arg13[%c0_36, %c0_37] : memref<128x128xbf16, #tpu.memory_space<vmem>>, vector<128x128xbf16>
    %cst_38 = arith.constant dense<0.000000e+00> : vector<8x128xf32>
    %56 = tpu.matmul %54, %55, %cst_38 {dimension_numbers = #tpu.dot_dimension_numbers<[1], [0], [0], [1], [0, 0, 1, 1], [], []>} : vector<8x128xbf16>, vector<128x128xbf16>, vector<8x128xf32> -> vector<8x128xf32>
    %c0_39 = arith.constant 0 : index
    %c0_40 = arith.constant 0 : index
    %57 = vector.load %arg14[%c0_39, %c0_40] : memref<1x128xf32, #tpu.memory_space<vmem>>, vector<1x128xf32>
    %58 = vector.broadcast %57 : vector<1x128xf32> to vector<8x128xf32>
    %59 = arith.addf %56, %58 : vector<8x128xf32>
    %60 = arith.truncf %59 : vector<8x128xf32> to vector<8x128xbf16>
    %c0_41 = arith.constant 0 : index
    %c0_42 = arith.constant 0 : index
    %61 = vector.load %arg15[%c0_41, %c0_42] : memref<128x128xbf16, #tpu.memory_space<vmem>>, vector<128x128xbf16>
    %cst_43 = arith.constant dense<0.000000e+00> : vector<8x128xf32>
    %62 = tpu.matmul %60, %61, %cst_43 {dimension_numbers = #tpu.dot_dimension_numbers<[1], [0], [0], [1], [0, 0, 1, 1], [], []>} : vector<8x128xbf16>, vector<128x128xbf16>, vector<8x128xf32> -> vector<8x128xf32>
    %c0_44 = arith.constant 0 : index
    %c0_45 = arith.constant 0 : index
    %63 = vector.load %arg16[%c0_44, %c0_45] : memref<1x128xf32, #tpu.memory_space<vmem>>, vector<1x128xf32>
    %64 = vector.broadcast %63 : vector<1x128xf32> to vector<8x128xf32>
    %65 = arith.addf %62, %64 : vector<8x128xf32>
    %cst_46 = arith.constant 0.000000e+00 : f32
    %66 = vector.broadcast %cst_46 : f32 to vector<8x128xf32>
    %67 = arith.cmpf oge, %65, %66 : vector<8x128xf32>
    %cst_47 = arith.constant 2.000000e-01 : f32
    %68 = vector.broadcast %cst_47 : f32 to vector<8x128xf32>
    %69 = arith.mulf %68, %65 : vector<8x128xf32>
    %70 = arith.select %67, %65, %69 : vector<8x128xi1>, vector<8x128xf32>
    %71 = arith.truncf %70 : vector<8x128xf32> to vector<8x128xbf16>
    %c0_48 = arith.constant 0 : index
    %c0_49 = arith.constant 0 : index
    %72 = vector.load %arg17[%c0_48, %c0_49] : memref<128x64xbf16, #tpu.memory_space<vmem>>, vector<128x64xbf16>
    %cst_50 = arith.constant dense<0.000000e+00> : vector<8x64xf32>
    %73 = tpu.matmul %71, %72, %cst_50 {dimension_numbers = #tpu.dot_dimension_numbers<[1], [0], [0], [1], [0, 0, 1, 1], [], []>} : vector<8x128xbf16>, vector<128x64xbf16>, vector<8x64xf32> -> vector<8x64xf32>
    %c0_51 = arith.constant 0 : index
    %c0_52 = arith.constant 0 : index
    %74 = vector.load %arg18[%c0_51, %c0_52] : memref<1x64xf32, #tpu.memory_space<vmem>>, vector<1x64xf32>
    %75 = vector.broadcast %74 : vector<1x64xf32> to vector<8x64xf32>
    %76 = arith.addf %73, %75 : vector<8x64xf32>
    %cst_53 = arith.constant 0.000000e+00 : f32
    %77 = vector.broadcast %cst_53 : f32 to vector<8x64xf32>
    %78 = arith.cmpf oge, %76, %77 : vector<8x64xf32>
    %cst_54 = arith.constant 2.000000e-01 : f32
    %79 = vector.broadcast %cst_54 : f32 to vector<8x64xf32>
    %80 = arith.mulf %79, %76 : vector<8x64xf32>
    %81 = arith.select %78, %76, %80 : vector<8x64xi1>, vector<8x64xf32>
    %c0_55 = arith.constant 0 : index
    %c0_56 = arith.constant 0 : index
    %82 = vector.load %arg19[%c0_55, %c0_56] : memref<1x64xf32, #tpu.memory_space<vmem>>, vector<1x64xf32>
    %83 = vector.broadcast %82 : vector<1x64xf32> to vector<8x64xf32>
    %84 = arith.mulf %81, %83 : vector<8x64xf32>
    %cst_57 = arith.constant dense<0.000000e+00> : vector<8xf32>
    %85 = vector.multi_reduction <add>, %84, %cst_57 [1] : vector<8x64xf32> to vector<8xf32>
    %86 = vector.shape_cast %85 : vector<8xf32> to vector<8x1xf32>
    %c0_58 = arith.constant 0 : index
    %c0_59 = arith.constant 0 : index
    %87 = vector.load %arg20[%c0_58, %c0_59] : memref<1x1xf32, #tpu.memory_space<vmem>>, vector<1x1xf32>
    %88 = vector.broadcast %87 : vector<1x1xf32> to vector<8x1xf32>
    %89 = arith.addf %86, %88 : vector<8x1xf32>
    %90 = math.absf %89 : vector<8x1xf32>
    %cst_60 = arith.constant 0.000000e+00 : f32
    %91 = vector.broadcast %cst_60 : f32 to vector<8x1xf32>
    %92 = arith.subf %91, %90 : vector<8x1xf32>
    %93 = math.exp %92 : vector<8x1xf32>
    %cst_61 = arith.constant 1.000000e+00 : f32
    %94 = vector.broadcast %cst_61 : f32 to vector<8x1xf32>
    %95 = arith.addf %94, %93 : vector<8x1xf32>
    %96 = tpu.reciprocal %95 {approx = true} : vector<8x1xf32> -> vector<8x1xf32>
    %cst_62 = arith.constant 0.000000e+00 : f32
    %97 = vector.broadcast %cst_62 : f32 to vector<8x1xf32>
    %98 = arith.cmpf oge, %89, %97 : vector<8x1xf32>
    %99 = arith.mulf %93, %96 : vector<8x1xf32>
    %100 = arith.select %98, %96, %99 : vector<8x1xi1>, vector<8x1xf32>
    %101 = tpu.iota {dimensions = array<i32: 1>} : vector<8x128xi32>
    %c32_i32 = arith.constant 32 : i32
    %102 = vector.broadcast %c32_i32 : i32 to vector<8x128xi32>
    %103 = arith.cmpi eq, %101, %102 : vector<8x128xi32>
    %104 = vector.shape_cast %100 : vector<8x1xf32> to vector<8x1xf32>
    %105 = vector.broadcast %104 : vector<8x1xf32> to vector<8x128xf32>
    %106 = arith.select %103, %105, %59 : vector<8x128xi1>, vector<8x128xf32>
    %107 = arith.truncf %106 : vector<8x128xf32> to vector<8x128xbf16>
    %c0_63 = arith.constant 0 : index
    %c0_64 = arith.constant 0 : index
    %108 = vector.load %arg21[%c0_63, %c0_64] : memref<8x128xbf16, #tpu.memory_space<vmem>>, vector<8x128xbf16>
    tpu.vector_store %arg21[%c0_63, %c0_64], %107 {strides = array<i32>} : memref<8x128xbf16, #tpu.memory_space<vmem>>, vector<8x128xbf16>,
    return
  }
  func.func @transform_0(%arg0: i32) -> (i32, i32) {
    %c0_i32 = arith.constant 0 : i32
    %c0_i32_0 = arith.constant 0 : i32
    return %arg0, %c0_i32 : i32, i32
  }
  func.func @transform_1(%arg0: i32) -> (i32, i32) {
    %c0_i32 = arith.constant 0 : i32
    %c0_i32_0 = arith.constant 0 : i32
    return %arg0, %c0_i32 : i32, i32
  }
  func.func @transform_2(%arg0: i32) -> (i32, i32) {
    %c0_i32 = arith.constant 0 : i32
    %c0_i32_0 = arith.constant 0 : i32
    %c0_i32_1 = arith.constant 0 : i32
    return %c0_i32, %c0_i32_0 : i32, i32
  }
  func.func @transform_3(%arg0: i32) -> (i32, i32) {
    %c0_i32 = arith.constant 0 : i32
    %c0_i32_0 = arith.constant 0 : i32
    %c0_i32_1 = arith.constant 0 : i32
    return %c0_i32, %c0_i32_0 : i32, i32
  }
  func.func @transform_4(%arg0: i32) -> (i32, i32) {
    %c0_i32 = arith.constant 0 : i32
    %c0_i32_0 = arith.constant 0 : i32
    %c0_i32_1 = arith.constant 0 : i32
    return %c0_i32, %c0_i32_0 : i32, i32
  }
  func.func @transform_5(%arg0: i32) -> (i32, i32) {
    %c0_i32 = arith.constant 0 : i32
    %c0_i32_0 = arith.constant 0 : i32
    %c0_i32_1 = arith.constant 0 : i32
    return %c0_i32, %c0_i32_0 : i32, i32
  }
  func.func @transform_6(%arg0: i32) -> (i32, i32) {
    %c0_i32 = arith.constant 0 : i32
    %c0_i32_0 = arith.constant 0 : i32
    %c0_i32_1 = arith.constant 0 : i32
    return %c0_i32, %c0_i32_0 : i32, i32
  }
  func.func @transform_7(%arg0: i32) -> (i32, i32) {
    %c0_i32 = arith.constant 0 : i32
    %c0_i32_0 = arith.constant 0 : i32
    %c0_i32_1 = arith.constant 0 : i32
    return %c0_i32, %c0_i32_0 : i32, i32
  }
  func.func @transform_8(%arg0: i32) -> (i32, i32) {
    %c0_i32 = arith.constant 0 : i32
    %c0_i32_0 = arith.constant 0 : i32
    %c0_i32_1 = arith.constant 0 : i32
    return %c0_i32, %c0_i32_0 : i32, i32
  }
  func.func @transform_9(%arg0: i32) -> (i32, i32) {
    %c0_i32 = arith.constant 0 : i32
    %c0_i32_0 = arith.constant 0 : i32
    %c0_i32_1 = arith.constant 0 : i32
    return %c0_i32, %c0_i32_0 : i32, i32
  }
  func.func @transform_10(%arg0: i32) -> (i32, i32) {
    %c0_i32 = arith.constant 0 : i32
    %c0_i32_0 = arith.constant 0 : i32
    %c0_i32_1 = arith.constant 0 : i32
    return %c0_i32, %c0_i32_0 : i32, i32
  }
  func.func @transform_11(%arg0: i32) -> (i32, i32) {
    %c0_i32 = arith.constant 0 : i32
    %c0_i32_0 = arith.constant 0 : i32
    %c0_i32_1 = arith.constant 0 : i32
    return %c0_i32, %c0_i32_0 : i32, i32
  }
  func.func @transform_12(%arg0: i32) -> (i32, i32) {
    %c0_i32 = arith.constant 0 : i32
    %c0_i32_0 = arith.constant 0 : i32
    %c0_i32_1 = arith.constant 0 : i32
    return %c0_i32, %c0_i32_0 : i32, i32
  }
  func.func @transform_13(%arg0: i32) -> (i32, i32) {
    %c0_i32 = arith.constant 0 : i32
    %c0_i32_0 = arith.constant 0 : i32
    %c0_i32_1 = arith.constant 0 : i32
    return %c0_i32, %c0_i32_0 : i32, i32
  }
  func.func @transform_14(%arg0: i32) -> (i32, i32) {
    %c0_i32 = arith.constant 0 : i32
    %c0_i32_0 = arith.constant 0 : i32
    %c0_i32_1 = arith.constant 0 : i32
    return %c0_i32, %c0_i32_0 : i32, i32
  }
  func.func @transform_15(%arg0: i32) -> (i32, i32) {
    %c0_i32 = arith.constant 0 : i32
    %c0_i32_0 = arith.constant 0 : i32
    %c0_i32_1 = arith.constant 0 : i32
    return %c0_i32, %c0_i32_0 : i32, i32
  }
  func.func @transform_16(%arg0: i32) -> (i32, i32) {
    %c0_i32 = arith.constant 0 : i32
    %c0_i32_0 = arith.constant 0 : i32
    %c0_i32_1 = arith.constant 0 : i32
    return %c0_i32, %c0_i32_0 : i32, i32
  }
  func.func @transform_17(%arg0: i32) -> (i32, i32) {
    %c0_i32 = arith.constant 0 : i32
    %c0_i32_0 = arith.constant 0 : i32
    %c0_i32_1 = arith.constant 0 : i32
    return %c0_i32, %c0_i32_0 : i32, i32
  }
  func.func @transform_18(%arg0: i32) -> (i32, i32) {
    %c0_i32 = arith.constant 0 : i32
    %c0_i32_0 = arith.constant 0 : i32
    %c0_i32_1 = arith.constant 0 : i32
    return %c0_i32, %c0_i32_0 : i32, i32
  }
  func.func @transform_19(%arg0: i32) -> (i32, i32) {
    %c0_i32 = arith.constant 0 : i32
    %c0_i32_0 = arith.constant 0 : i32
    %c0_i32_1 = arith.constant 0 : i32
    return %c0_i32, %c0_i32_0 : i32, i32
  }
  func.func @transform_20(%arg0: i32) -> (i32, i32) {
    %c0_i32 = arith.constant 0 : i32
    %c0_i32_0 = arith.constant 0 : i32
    return %arg0, %c0_i32 : i32, i32
  }
  func.func @transform_21(%arg0: i32) -> (i32, i32) {
    %c0_i32 = arith.constant 0 : i32
    %c0_i32_0 = arith.constant 0 : i32
    return %arg0, %c0_i32 : i32, i32
  }
}

</mosaic_0001>

<bundles_post_ra>
// kernel: vaegan_forward.1
= control target key start
LH: loop header
LB: loop body
LE: loop exit
PB: predicated region body
PF: predicated region fallthrough
CT: control target
= control target key end

     0   :  { %s1818_s0 = inlined_call_operand.vmem [shape: bf16[8,128], index: 0, kind: input, shape index: {}]   ;;  %s1819_s1 = inlined_call_operand.vmem [shape: bf16[8,128], index: 1, kind: input, shape index: {}]   ;;  %s1820_s2 = inlined_call_operand.vmem [shape: bf16[128,128], index: 2, kind: input, shape index: {}]   ;;  %s1821_s3 = inlined_call_operand.hbm [shape: f32[1,128], index: 3, kind: input, shape index: {}]   ;;  %s1822_s4 = inlined_call_operand.vmem [shape: bf16[128,64], index: 4, kind: input, shape index: {}]   ;;  %s1823_s5 = inlined_call_operand.hbm [shape: f32[1,64], index: 5, kind: input, shape index: {}]   ;;  %s1824_s6 = inlined_call_operand.vmem [shape: bf16[64,128], index: 6, kind: input, shape index: {}]   ;;  %s1825_s7 = inlined_call_operand.vmem [shape: f32[1,128], index: 7, kind: input, shape index: {}]   ;;  %s1826_s8 = inlined_call_operand.vmem [shape: bf16[128,64], index: 8, kind: input, shape index: {}]   ;;  %s1827_s9 = inlined_call_operand.vmem [shape: f32[1,64], index: 9, kind: input, shape index: {}]   ;;  %s1828_s10 = inlined_call_operand.vmem [shape: bf16[64,128], index: 10, kind: input, shape index: {}]   ;;  %s1829_s11 = inlined_call_operand.vmem [shape: f32[1,128], index: 11, kind: input, shape index: {}]   ;;  %s1830_s12 = inlined_call_operand.vmem [shape: bf16[128,128], index: 12, kind: input, shape index: {}]   ;;  %s1831_s13 = inlined_call_operand.vmem [shape: f32[1,128], index: 13, kind: input, shape index: {}]   ;;  %s1832_s14 = inlined_call_operand.vmem [shape: bf16[128,128], index: 14, kind: input, shape index: {}]   ;;  %s1833_s15 = inlined_call_operand.vmem [shape: f32[1,128], index: 15, kind: input, shape index: {}]   ;;  %s1834_s16 = inlined_call_operand.vmem [shape: bf16[128,64], index: 16, kind: input, shape index: {}]   ;;  %s1835_s17 = inlined_call_operand.vmem [shape: f32[1,64], index: 17, kind: input, shape index: {}]   ;;  %s1836_s18 = inlined_call_operand.vmem [shape: f32[1,64], index: 18, kind: input, shape index: {}]   ;;  %s1837_s19 = inlined_call_operand.<no memory space> [shape: f32[1,1], index: 19, kind: input, shape index: {}]   ;;  %s1838_s20 = inlined_call_operand.vmem [shape: bf16[8,128], index: 20, kind: output, shape index: {0}]   ;;  %s1839_s21 = inlined_call_operand.vmem [shape: bf16[8,128], index: 21, kind: output, shape index: {1}]  }
   0x1   :  { %1844 = sst [smem:[#allocation9_spill]] %s1818_s0  ;;  %v27_v0 = vstv %s1837_s19 }
   0x2   :  { %1845 = sst [smem:[#allocation10_spill]] %s1819_s1  ;;  %28 = vst [vmem:[#allocation2] sm:$0x1] %v27_v0 }
   0x3   :  { %1846 = sst [smem:[#allocation11_spill]] %s1820_s2 }
   0x4   :  { %1847 = sst [smem:[#allocation12_spill]] %s1821_s3 }
   0x5   :  { %1848 = sst [smem:[#allocation13_spill]] %s1822_s4 }
   0x6   :  { %1849 = sst [smem:[#allocation14_spill]] %s1823_s5 }
   0x7   :  { %29 = vsyncpa [#allocation4], 0 }
   0x8   :  { %30 = vsyncpa [#allocation6], 0  ;;  %s1396_s26 = smov [#allocation3]   ;;  %s1397_s3 = smov [#allocation5]  }
   0x9   :  { %s43_s27 = sshll.u32 %s1396_s26, 4  ;;  %s55_s28 = sshll.u32 %s1397_s3, 4  ;;  %s44_s27 = int_to_ptr.vmem [resolvable:$true] %s43_s27  ;;  %s56_s28 = int_to_ptr.vmem [resolvable:$true] %s55_s28 }
   0xa   :  { %s1850_s4 = sld [smem:[#allocation12_spill]] }
  0x10   :  { %s1348_s30 = scalar_lea.hbm %s1850_s4, 16 }
  0x11   :  { %p1349_p0 = scmp.ne.s32.totalorder %s1850_s4, %s1348_s30  ;;  %p1352_p1 = scmp.lt.u32.totalorder %s1348_s30, %s1850_s4 }
  0x13   :  { %p1354_p2 = pnand %p1352_p1, %p1349_p0 }
  0x15   :  { %1357 = shalt.err (!%p1354_p2)
}
  0x16   :  { %s1358_s19 = scalar_lea.vmem %s44_s27, 16  ;;  %s1362_s24 = scalar_lea.vmem %s44_s27, 32 }
  0x17   :  { %p1359_p3 = scmp.ne.s32.totalorder %s44_s27, %s1358_s19  ;;  %p1363_p4 = scmp.lt.s32.totalorder %s44_s27, %s44_s27 }
  0x18   :  { %p1364_p5 = scmp.lt.s32.totalorder %s1362_s24, %s1358_s19 }
  0x1a   :  { %p1365_p6 = por %p1364_p5, %p1363_p4 }
  0x1c   :  { %p1366_p7 = pnand %p1365_p6, %p1359_p3 }
  0x1e   :  { %1369 = shalt.err (!%p1366_p7)
}
  0x1f   :  { %46 = dma.hbm_to_vmem [thread:$0]  %s1850_s4, 16, %s44_s27, [#allocation4]  }
  0x20   :  { %s1851_s29 = sld [smem:[#allocation14_spill]] }
  0x26   :  { %s1370_s0 = scalar_lea.hbm %s1851_s29, 16 }
  0x27   :  { %p1371_p8 = scmp.ne.s32.totalorder %s1851_s29, %s1370_s0  ;;  %p1374_p9 = scmp.lt.u32.totalorder %s1370_s0, %s1851_s29 }
  0x29   :  { %p1376_p10 = pnand %p1374_p9, %p1371_p8 }
  0x2b   :  { %1379 = shalt.err (!%p1376_p10)
}
  0x2c   :  { %s1380_s1 = scalar_lea.vmem %s56_s28, 16  ;;  %s1384_s19 = scalar_lea.vmem %s56_s28, 32 }
  0x2d   :  { %p1381_p11 = scmp.ne.s32.totalorder %s56_s28, %s1380_s1  ;;  %p1385_p12 = scmp.lt.s32.totalorder %s56_s28, %s56_s28 }
  0x2e   :  { %p1386_p13 = scmp.lt.s32.totalorder %s1384_s19, %s1380_s1 }
  0x30   :  { %p1387_p0 = por %p1386_p13, %p1385_p12 }
  0x32   :  { %p1388_p1 = pnand %p1387_p0, %p1381_p11 }
  0x34   :  { %1391 = shalt.err (!%p1388_p1)
}
  0x35   :  { %58 = dma.hbm_to_vmem [thread:$0]  %s1851_s29, 16, %s56_s28, [#allocation6]  }
  0x36   :  { %1392 = dma.done.wait [#allocation4], 16  }
  0x37   :  { %1393 = vsyncadd [#allocation4], 4294967280 }
  0x38   :  { %1394 = dma.done.wait [#allocation6], 16  }
  0x39   :  { %1395 = vsyncadd [#allocation6], 4294967280  ;;  %v1398_v1 = vmov 0.0   ;;  %vm1399_vm0 = vmmov 0   ;;  %s1852_s25 = sld [smem:[#allocation11_spill]]  ;;  %s1853_s30 = sld [smem:[#allocation13_spill]]  ;;  %v406_v49 = vlaneseq }
  0x3a   :  { %1136 = vmatprep.subr.bf16.mxu0 %v1398_v1  ;;  %1152 = vmatprep.mubr.msk.bf16.mxu0 %vm1399_vm0, %v1398_v1  ;;  %s1854_s28 = sld [smem:[#allocation9_spill]]  ;;  %v1004_v19 = vld [vmem:[#allocation3] ss:$0 sm:$0xff]  ;;  %v1303_v28 = vld [vmem:[%s1824_s6 + $0x8] sm:$0xff]   ;;  %v1304_v29 = vld [vmem:[%s1824_s6 + $0x10] sm:$0xff]   ;;  %vm360_vm1 = vcmask 523264  }
  0x3b   :  { %1156 = vmatprep.subr.bf16.mxu1 %v1398_v1  ;;  %1172 = vmatprep.mubr.msk.bf16.mxu1 %vm1399_vm0, %v1398_v1  ;;  %v1302_v26 = vld [vmem:[%s1824_s6] sm:$0xff]   ;;  %v1305_v30 = vld [vmem:[%s1824_s6 + $0x18] sm:$0xff]   ;;  %v1307_v40 = vld [vmem:[%s1826_s8 + $0x8] sm:$0xff]   ;;  %v1674_v50 = vand.u32 127, %v406_v49  ;;  %s1855_s29 = sld [smem:[#allocation10_spill]] }
  0x3c   :  { %v1013_v31 = vld [vmem:[#allocation5] ss:$0 sm:$0xff]  ;;  %v1308_v41 = vld [vmem:[%s1826_s8 + $0x10] sm:$0xff]   ;;  %v1309_v42 = vld [vmem:[%s1826_s8 + $0x18] sm:$0xff]  }
  0x3d   :  { %v1306_v38 = vld [vmem:[%s1826_s8] sm:$0xff]   ;;  %v1311_v44 = vld [vmem:[%s1826_s8 + $0x28] sm:$0xff]   ;;  %v1312_v45 = vld [vmem:[%s1826_s8 + $0x30] sm:$0xff]   ;;  %vm408_vm2 = vcmp.lt.s32.totalorder %v1674_v50, 8  ;;  %vm985_vm6 = vcmp.eq.s32.totalorder %v1674_v50, 32 }
  0x3e   :  { %v1310_v43 = vld [vmem:[%s1826_s8 + $0x20] sm:$0xff]   ;;  %v1313_v46 = vld [vmem:[%s1826_s8 + $0x38] sm:$0xff]   ;;  %v1315_v48 = vld [vmem:[%s1828_s10 + $0x8] sm:$0xff]  }
  0x3f   :  { %v1286_v2 = vld [vmem:[%s1852_s25] sm:$0xff]   ;;  %v1287_v3 = vld [vmem:[%s1852_s25 + $0x8] sm:$0xff]   ;;  %v1288_v4 = vld [vmem:[%s1852_s25 + $0x10] sm:$0xff]  }
  0x40   :  { %1137 = vmatpush3.bf16.msra.mxu0 %v1286_v2  ;;  %v1294_v5 = vld [vmem:[%s1853_s30] sm:$0xff]   ;;  %v1289_v6 = vld [vmem:[%s1852_s25 + $0x18] sm:$0xff]   ;;  %v1295_v7 = vld [vmem:[%s1853_s30 + $0x8] sm:$0xff]  }
  0x41   :  { %1138 = vmatprep.subr.bf16.mxu0 %v1398_v1  ;;  %1157 = vmatpush3.bf16.msra.mxu1 %v1294_v5  ;;  %v1290_v8 = vld [vmem:[%s1852_s25 + $0x20] sm:$0xff]   ;;  %v1296_v9 = vld [vmem:[%s1853_s30 + $0x10] sm:$0xff]   ;;  %v1291_v10 = vld [vmem:[%s1852_s25 + $0x28] sm:$0xff]  }
  0x42   :  { %1158 = vmatprep.subr.bf16.mxu1 %v1398_v1  ;;  %v1297_v11 = vld [vmem:[%s1853_s30 + $0x18] sm:$0xff]   ;;  %v1292_v12 = vld [vmem:[%s1852_s25 + $0x30] sm:$0xff]   ;;  %v1298_v13 = vld [vmem:[%s1853_s30 + $0x20] sm:$0xff]  }
  0x43   :  { %v1293_v14 = vld [vmem:[%s1852_s25 + $0x38] sm:$0xff]   ;;  %v1299_v15 = vld [vmem:[%s1853_s30 + $0x28] sm:$0xff]   ;;  %v94_v16 = vld [vmem:[%s1854_s28] sm:$0xf] }
  0x44   :  { %1139 = vmatpush3.bf16.msra.mxu0 %v1287_v3  ;;  %v1300_v17 = vld [vmem:[%s1853_s30 + $0x30] sm:$0xff]   ;;  %v1301_v18 = vld [vmem:[%s1853_s30 + $0x38] sm:$0xff]   ;;  %v1314_v47 = vld [vmem:[%s1828_s10] sm:$0xff]  }
  0x45   :  { %1140 = vmatprep.subr.bf16.mxu0 %v1398_v1  ;;  %1159 = vmatpush3.bf16.msra.mxu1 %v1295_v7  ;;  %v1022_v51 = vld [vmem:[%s1825_s7] ss:$0 sm:$0xff]  ;;  %v1316_v5 = vld [vmem:[%s1828_s10 + $0x10] sm:$0xff]  }
  0x46   :  { %1160 = vmatprep.subr.bf16.mxu1 %v1398_v1  ;;  %v414_v61 = vld [vmem:[%s1855_s29] sm:$0xf] }
  0x47   :  { %v415_v62 = vunpack.c.l.bf16 %v414_v61  ;;  %v1028_v7 = vld [vmem:[%s1827_s9] ss:$0 sm:$0xff] }
  0x48   :  { %1141 = vmatpush3.bf16.msra.mxu0 %v1288_v4 }
  0x49   :  { %1142 = vmatprep.subr.bf16.mxu0 %v1398_v1  ;;  %1161 = vmatpush3.bf16.msra.mxu1 %v1296_v9 }
  0x4a   :  { %1162 = vmatprep.subr.bf16.mxu1 %v1398_v1 }
  0x4c   :  { %1143 = vmatpush3.bf16.msra.mxu0 %v1289_v6  ;;  %v1317_v6 = vld [vmem:[%s1828_s10 + $0x18] sm:$0xff]  }
  0x4d   :  { %1144 = vmatprep.subr.bf16.mxu0 %v1398_v1  ;;  %1163 = vmatpush3.bf16.msra.mxu1 %v1297_v11 }
  0x4e   :  { %1164 = vmatprep.subr.bf16.mxu1 %v1398_v1 }
  0x50   :  { %1145 = vmatpush3.bf16.msra.mxu0 %v1290_v8 }
  0x51   :  { %1146 = vmatprep.subr.bf16.mxu0 %v1398_v1  ;;  %1165 = vmatpush3.bf16.msra.mxu1 %v1298_v13 }
  0x52   :  { %1166 = vmatprep.subr.bf16.mxu1 %v1398_v1 }
  0x54   :  { %1147 = vmatpush3.bf16.msra.mxu0 %v1291_v10 }
  0x55   :  { %1148 = vmatprep.subr.bf16.mxu0 %v1398_v1  ;;  %1167 = vmatpush3.bf16.msra.mxu1 %v1299_v15 }
  0x56   :  { %1168 = vmatprep.subr.bf16.mxu1 %v1398_v1 }
  0x58   :  { %1149 = vmatpush3.bf16.msra.mxu0 %v1292_v12 }
  0x59   :  { %1150 = vmatprep.subr.bf16.mxu0 %v1398_v1  ;;  %1169 = vmatpush3.bf16.msra.mxu1 %v1300_v17  ;;  %v1320_v17 = vld [vmem:[%s1830_s12 + $0x10] sm:$0xff]  }
  0x5a   :  { %1170 = vmatprep.subr.bf16.mxu1 %v1398_v1 }
  0x5c   :  { %1151 = vmatpush3.bf16.msra.mxu0 %v1293_v14  ;;  %v1318_v14 = vld [vmem:[%s1830_s12] sm:$0xff]  }
  0x5d   :  { %1208 = vmatprep.subr.bf16.mxu0 %v1398_v1  ;;  %1171 = vmatpush3.bf16.msra.mxu1 %v1301_v18  ;;  %v1321_v18 = vld [vmem:[%s1830_s12 + $0x18] sm:$0xff]  }
  0x5e   :  { %1176 = vmatprep.subr.bf16.mxu1 %v1398_v1 }
  0x5f   :  { %1153 = vmatmul.mubr.bf16.vlgmr.msra.gmra.mrb[0].mxu0 %v94_v16  ;;  %v1319_v16 = vld [vmem:[%s1830_s12 + $0x8] sm:$0xff]  }
  0x60   :  { %1216 = vmatprep.mubr.msk.bf16.mxu0 %vm1399_vm0, %v1398_v1  ;;  %1209 = vmatpush3.bf16.msra.mxu0 %v1314_v47 }
  0x61   :  { %1210 = vmatprep.subr.bf16.mxu0 %v1398_v1 }
  0x64   :  { %1211 = vmatpush3.bf16.msra.mxu0 %v1315_v48 }
  0x65   :  { %1212 = vmatprep.subr.bf16.mxu0 %v1398_v1 }
  0x68   :  { %1213 = vmatpush3.bf16.msra.mxu0 %v1316_v5 }
  0x69   :  { %1214 = vmatprep.subr.bf16.mxu0 %v1398_v1 }
  0x6c   :  { %1215 = vmatpush3.bf16.msra.mxu0 %v1317_v6 }
  0x6d   :  { %1220 = vmatprep.subr.bf16.mxu0 %v1398_v1 }
 0x132   :  { %v200_v20 = vpop.f32.mrb[0].mxu0 }
 0x133   :  { %v201_v21 = vadd.f32 %v1004_v19, %v200_v20  ;;  %v1154_v22 = vpop.f32.mrb[1].mxu0  ;;  %v1322_v19 = vld [vmem:[%s1830_s12 + $0x20] sm:$0xff]   ;;  %v1323_v20 = vld [vmem:[%s1830_s12 + $0x28] sm:$0xff]  }
 0x134   :  { %v203_v23 = vpop.f32.mrb[2].mxu0  ;;  %v1325_v22 = vld [vmem:[%s1830_s12 + $0x38] sm:$0xff]  }
 0x135   :  { %v206_v24 = vmax.f32 %v201_v21, 0.0  ;;  %v1155_v25 = vpop.f32.mrb[3].mxu0  ;;  %v1324_v21 = vld [vmem:[%s1830_s12 + $0x30] sm:$0xff]   ;;  %v1326_v23 = vld [vmem:[%s1832_s14] sm:$0xff]  }
 0x136   :  { %v1328_v25 = vld [vmem:[%s1832_s14 + $0x10] sm:$0xff]  }
 0x137   :  { %v207_v27 = vpack.c.bf16 %v206_v24, %v206_v24  ;;  %v1327_v24 = vld [vmem:[%s1832_s14 + $0x8] sm:$0xff]  }
 0x139   :  { %1173 = vmatmul.mubr.bf16.vlgmr.msra.gmra.mrb[0].mxu1 %v207_v27  ;;  %v1330_v27 = vld [vmem:[%s1832_s14 + $0x20] sm:$0xff]  }
 0x13a   :  { %1177 = vmatpush3.bf16.msra.mxu1 %v1302_v26  ;;  %1184 = vmatprep.mubr.msk.bf16.mxu1 %vm1399_vm0, %v1398_v1  ;;  %v1329_v26 = vld [vmem:[%s1832_s14 + $0x18] sm:$0xff]  }
 0x13b   :  { %1178 = vmatprep.subr.bf16.mxu1 %v1398_v1 }
 0x13e   :  { %1179 = vmatpush3.bf16.msra.mxu1 %v1303_v28  ;;  %v1331_v28 = vld [vmem:[%s1832_s14 + $0x28] sm:$0xff]  }
 0x13f   :  { %1180 = vmatprep.subr.bf16.mxu1 %v1398_v1 }
 0x142   :  { %1181 = vmatpush3.bf16.msra.mxu1 %v1304_v29  ;;  %v1332_v29 = vld [vmem:[%s1832_s14 + $0x30] sm:$0xff]  }
 0x143   :  { %1182 = vmatprep.subr.bf16.mxu1 %v1398_v1 }
 0x146   :  { %1183 = vmatpush3.bf16.msra.mxu1 %v1305_v30  ;;  %v1037_v30 = vld [vmem:[%s1829_s11] ss:$0 sm:$0xff] }
 0x147   :  { %1188 = vmatprep.subr.bf16.mxu1 %v1398_v1 }
 0x20c   :  { %v313_v32 = vpop.f32.mrb[0].mxu1 }
 0x20d   :  { %v314_v33 = vadd.f32 %v1013_v31, %v313_v32  ;;  %v1174_v34 = vpop.f32.mrb[1].mxu1 }
 0x20e   :  { %v316_v35 = vpop.f32.mrb[2].mxu1 }
 0x20f   :  { %v319_v36 = vmax.f32 %v314_v33, 0.0  ;;  %v1175_v37 = vpop.f32.mrb[3].mxu1 }
 0x211   :  { %v320_v39 = vpack.c.bf16 %v319_v36, %v319_v36 }
 0x213   :  { %1185 = vmatmul.mubr.msk.bf16.vlgmr.msra.gmra.mrb[4].mxu1 %vm360_vm1, %v320_v39  ;;  %v1334_v39 = vld [vmem:[%s1834_s16] sm:$0xff]  }
 0x214   :  { %1189 = vmatpush3.bf16.msra.mxu1 %v1306_v38  ;;  %1204 = vmatprep.mubr.msk.bf16.mxu1 %vm1399_vm0, %v1398_v1  ;;  %v1333_v38 = vld [vmem:[%s1832_s14 + $0x38] sm:$0xff]  }
 0x215   :  { %1190 = vmatprep.subr.bf16.mxu1 %v1398_v1 }
 0x218   :  { %1191 = vmatpush3.bf16.msra.mxu1 %v1307_v40  ;;  %v1335_v40 = vld [vmem:[%s1834_s16 + $0x8] sm:$0xff]  }
 0x219   :  { %1192 = vmatprep.subr.bf16.mxu1 %v1398_v1 }
 0x21c   :  { %1193 = vmatpush3.bf16.msra.mxu1 %v1308_v41  ;;  %v1336_v41 = vld [vmem:[%s1834_s16 + $0x10] sm:$0xff]  }
 0x21d   :  { %1194 = vmatprep.subr.bf16.mxu1 %v1398_v1 }
 0x220   :  { %1195 = vmatpush3.bf16.msra.mxu1 %v1309_v42  ;;  %v1337_v42 = vld [vmem:[%s1834_s16 + $0x18] sm:$0xff]  }
 0x221   :  { %1196 = vmatprep.subr.bf16.mxu1 %v1398_v1 }
 0x224   :  { %1197 = vmatpush3.bf16.msra.mxu1 %v1310_v43  ;;  %v1338_v43 = vld [vmem:[%s1834_s16 + $0x20] sm:$0xff]  }
 0x225   :  { %1198 = vmatprep.subr.bf16.mxu1 %v1398_v1 }
 0x228   :  { %1199 = vmatpush3.bf16.msra.mxu1 %v1311_v44  ;;  %v1339_v44 = vld [vmem:[%s1834_s16 + $0x28] sm:$0xff]  }
 0x229   :  { %1200 = vmatprep.subr.bf16.mxu1 %v1398_v1 }
 0x22c   :  { %1201 = vmatpush3.bf16.msra.mxu1 %v1312_v45  ;;  %v1043_v45 = vld [vmem:[%s1831_s13] ss:$0 sm:$0xff] }
 0x22d   :  { %1202 = vmatprep.subr.bf16.mxu1 %v1398_v1 }
 0x230   :  { %1203 = vmatpush3.bf16.msra.mxu1 %v1313_v46 }
 0x231   :  { %1240 = vmatprep.subr.bf16.mxu1 %v1398_v1 }
 0x2e6   :  { %v398_v52 = vpop.f32.mrb[4].mxu1 }
 0x2e7   :  { %v399_v53 = vadd.f32 %v1022_v51, %v398_v52  ;;  %v1186_v54 = vpop.f32.mrb[5].mxu1 }
 0x2e8   :  { %v401_v55 = vpop.f32.mrb[6].mxu1  ;;  %v1341_v54 = vld [vmem:[%s1834_s16 + $0x38] sm:$0xff]  }
 0x2e9   :  { %v404_v56 = vpack.c.bf16 %v399_v53, %v399_v53  ;;  %v409_v57 = vsel %vm408_vm2, 0.0, %v399_v53  ;;  %v1187_v58 = vpop.f32.mrb[7].mxu1  ;;  %v413_v2 = vsel %vm408_vm2, %v399_v53, 0.0  ;;  %v1340_v53 = vld [vmem:[%s1834_s16 + $0x30] sm:$0xff]   ;;  %v1052_v55 = vld [vmem:[%s1833_s15] ss:$0 sm:$0xff] }
 0x2ea   :  { %v410_v59 = vmul.f32 0.5, %v409_v57 }
 0x2eb   :  { %405 = vst [vmem:[%s1839_s21] sm:$0xf] %v404_v56 }
 0x2ec   :  { %v411_v60 = vmul.f32 1.442695, %v410_v59 }
 0x2ee   :  { %1342 = vpow2.f32 %v411_v60 }
 0x2f8   :  { %v1343_v63 = vpop.eup %1342 }
 0x2f9   :  { %v416_v0 = vmul.f32 %v1343_v63, %v415_v62 }
 0x2fb   :  { %v417_v3 = vadd.f32 %v416_v0, %v413_v2 }
 0x2fd   :  { %v418_v4 = vpack.c.bf16 %v417_v3, %v417_v3 }
 0x2ff   :  { %1205 = vmatmul.mubr.bf16.vlgmr.msra.gmra.mrb[8].mxu1 %v418_v4 }
 0x300   :  { %1256 = vmatprep.mubr.msk.bf16.mxu1 %vm1399_vm0, %v1398_v1  ;;  %1241 = vmatpush3.bf16.msra.mxu1 %v1326_v23 }
 0x301   :  { %1242 = vmatprep.subr.bf16.mxu1 %v1398_v1 }
 0x304   :  { %1243 = vmatpush3.bf16.msra.mxu1 %v1327_v24 }
 0x305   :  { %1244 = vmatprep.subr.bf16.mxu1 %v1398_v1 }
 0x308   :  { %1245 = vmatpush3.bf16.msra.mxu1 %v1328_v25 }
 0x309   :  { %1246 = vmatprep.subr.bf16.mxu1 %v1398_v1 }
 0x30c   :  { %1247 = vmatpush3.bf16.msra.mxu1 %v1329_v26 }
 0x30d   :  { %1248 = vmatprep.subr.bf16.mxu1 %v1398_v1 }
 0x310   :  { %1249 = vmatpush3.bf16.msra.mxu1 %v1330_v27 }
 0x311   :  { %1250 = vmatprep.subr.bf16.mxu1 %v1398_v1 }
 0x314   :  { %1251 = vmatpush3.bf16.msra.mxu1 %v1331_v28 }
 0x315   :  { %1252 = vmatprep.subr.bf16.mxu1 %v1398_v1 }
 0x318   :  { %1253 = vmatpush3.bf16.msra.mxu1 %v1332_v29 }
 0x319   :  { %1254 = vmatprep.subr.bf16.mxu1 %v1398_v1 }
 0x31c   :  { %1255 = vmatpush3.bf16.msra.mxu1 %v1333_v38 }
 0x3d2   :  { %v524_v8 = vpop.f32.mrb[8].mxu1 }
 0x3d3   :  { %v525_v9 = vadd.f32 %v1028_v7, %v524_v8  ;;  %v1206_v10 = vpop.f32.mrb[9].mxu1  ;;  %v1070_v7 = vld [vmem:[%s1836_s18] ss:$0 sm:$0xff] }
 0x3d4   :  { %v527_v11 = vpop.f32.mrb[10].mxu1 }
 0x3d5   :  { %v530_v12 = vmax.f32 %v525_v9, 0.0  ;;  %v1207_v13 = vpop.f32.mrb[11].mxu1  ;;  %v1400_v11 = vmov 0  }
 0x3d6   :  { %1285 = vset.pattern.permute.xlu0 %v1400_v11 }
 0x3d7   :  { %v531_v15 = vpack.c.bf16 %v530_v12, %v530_v12  ;;  %v1071_v12 = vld [vmem:[#allocation2] ss:$0 sm:$0xff] }
 0x3d9   :  { %1217 = vmatmul.mubr.msk.bf16.vlgmr.msra.gmra.mrb[4].mxu0 %vm360_vm1, %v531_v15 }
 0x3da   :  { %1221 = vmatpush3.bf16.msra.mxu0 %v1318_v14  ;;  %1236 = vmatprep.mubr.msk.bf16.mxu0 %vm1399_vm0, %v1398_v1 }
 0x3db   :  { %1222 = vmatprep.subr.bf16.mxu0 %v1398_v1 }
 0x3de   :  { %1223 = vmatpush3.bf16.msra.mxu0 %v1319_v16 }
 0x3df   :  { %1224 = vmatprep.subr.bf16.mxu0 %v1398_v1 }
 0x3e2   :  { %1225 = vmatpush3.bf16.msra.mxu0 %v1320_v17 }
 0x3e3   :  { %1226 = vmatprep.subr.bf16.mxu0 %v1398_v1 }
 0x3e6   :  { %1227 = vmatpush3.bf16.msra.mxu0 %v1321_v18 }
 0x3e7   :  { %1228 = vmatprep.subr.bf16.mxu0 %v1398_v1 }
 0x3ea   :  { %1229 = vmatpush3.bf16.msra.mxu0 %v1322_v19 }
 0x3eb   :  { %1230 = vmatprep.subr.bf16.mxu0 %v1398_v1 }
 0x3ee   :  { %1231 = vmatpush3.bf16.msra.mxu0 %v1323_v20 }
 0x3ef   :  { %1232 = vmatprep.subr.bf16.mxu0 %v1398_v1 }
 0x3f2   :  { %1233 = vmatpush3.bf16.msra.mxu0 %v1324_v21 }
 0x3f3   :  { %1234 = vmatprep.subr.bf16.mxu0 %v1398_v1 }
 0x3f6   :  { %1235 = vmatpush3.bf16.msra.mxu0 %v1325_v22 }
 0x3f7   :  { %1260 = vmatprep.subr.bf16.mxu0 %v1398_v1 }
 0x4ac   :  { %v608_v31 = vpop.f32.mrb[4].mxu0 }
 0x4ad   :  { %v609_v32 = vadd.f32 %v1037_v30, %v608_v31  ;;  %v1218_v33 = vpop.f32.mrb[5].mxu0 }
 0x4ae   :  { %v611_v34 = vpop.f32.mrb[6].mxu0 }
 0x4af   :  { %v614_v35 = vmax.f32 %v609_v32, 0.0  ;;  %v1219_v36 = vpop.f32.mrb[7].mxu0 }
 0x4b1   :  { %v615_v37 = vpack.c.bf16 %v614_v35, %v614_v35 }
 0x4b3   :  { %1237 = vmatmul.mubr.bf16.vlgmr.msra.gmra.mrb[8].mxu0 %v615_v37 }
 0x4b4   :  { %1276 = vmatprep.mubr.msk.bf16.mxu0 %vm1399_vm0, %v1398_v1  ;;  %1261 = vmatpush3.bf16.msra.mxu0 %v1334_v39 }
 0x4b5   :  { %1262 = vmatprep.subr.bf16.mxu0 %v1398_v1 }
 0x4b8   :  { %1263 = vmatpush3.bf16.msra.mxu0 %v1335_v40 }
 0x4b9   :  { %1264 = vmatprep.subr.bf16.mxu0 %v1398_v1 }
 0x4bc   :  { %1265 = vmatpush3.bf16.msra.mxu0 %v1336_v41 }
 0x4bd   :  { %1266 = vmatprep.subr.bf16.mxu0 %v1398_v1 }
 0x4c0   :  { %1267 = vmatpush3.bf16.msra.mxu0 %v1337_v42 }
 0x4c1   :  { %1268 = vmatprep.subr.bf16.mxu0 %v1398_v1 }
 0x4c4   :  { %1269 = vmatpush3.bf16.msra.mxu0 %v1338_v43 }
 0x4c5   :  { %1270 = vmatprep.subr.bf16.mxu0 %v1398_v1 }
 0x4c8   :  { %1271 = vmatpush3.bf16.msra.mxu0 %v1339_v44 }
 0x4c9   :  { %1272 = vmatprep.subr.bf16.mxu0 %v1398_v1 }
 0x4cc   :  { %1273 = vmatpush3.bf16.msra.mxu0 %v1340_v53 }
 0x4cd   :  { %1274 = vmatprep.subr.bf16.mxu0 %v1398_v1  ;;  %v1061_v1 = vld [vmem:[%s1835_s17] ss:$0 sm:$0xff] }
 0x4d0   :  { %1275 = vmatpush3.bf16.msra.mxu0 %v1341_v54 }
 0x586   :  { %v721_v46 = vpop.f32.mrb[8].mxu0 }
 0x587   :  { %v722_v47 = vadd.f32 %v1043_v45, %v721_v46  ;;  %v1238_v48 = vpop.f32.mrb[9].mxu0 }
 0x588   :  { %v724_v49 = vpop.f32.mrb[10].mxu0 }
 0x589   :  { %v727_v51 = vpack.c.bf16 %v722_v47, %v722_v47  ;;  %v1239_v52 = vpop.f32.mrb[11].mxu0 }
 0x58b   :  { %1257 = vmatmul.mubr.bf16.vlgmr.msra.gmra.mrb[12].mxu1 %v727_v51 }
 0x65e   :  { %v833_v56 = vpop.f32.mrb[12].mxu1 }
 0x65f   :  { %v834_v57 = vadd.f32 %v1052_v55, %v833_v56  ;;  %v1258_v58 = vpop.f32.mrb[13].mxu1 }
 0x660   :  { %v836_v59 = vpop.f32.mrb[14].mxu1 }
 0x661   :  { %vm839_vm3 = vcmp.ge.f32.partialorder %v834_v57, 0.0  ;;  %v840_v60 = vmul.f32 0.2, %v834_v57  ;;  %v1259_v61 = vpop.f32.mrb[15].mxu1 }
 0x663   :  { %v841_v62 = vsel %vm839_vm3, %v834_v57, %v840_v60 }
 0x664   :  { %v842_v63 = vpack.c.bf16 %v841_v62, %v841_v62 }
 0x666   :  { %1277 = vmatmul.mubr.bf16.vlgmr.msra.gmra.mrb[12].mxu0 %v842_v63 }
 0x739   :  { %v948_v0 = vpop.f32.mrb[12].mxu0 }
 0x73a   :  { %v949_v2 = vadd.f32 %v1061_v1, %v948_v0  ;;  %v1278_v3 = vpop.f32.mrb[13].mxu0 }
 0x73b   :  { %v951_v4 = vpop.f32.mrb[14].mxu0 }
 0x73c   :  { %v955_v5 = vmul.f32 0.2, %v949_v2  ;;  %v1279_v6 = vpop.f32.mrb[15].mxu0  ;;  %vm954_vm4 = vcmp.ge.f32.partialorder %v949_v2, 0.0 }
 0x73e   :  { %v956_v8 = vsel %vm954_vm4, %v949_v2, %v955_v5 }
 0x73f   :  { %v964_v9 = vmul.f32 %v1070_v7, %v956_v8 }
 0x741   :  { %v965_v10 = vsel %vm360_vm1, %v964_v9, 0.0 }
 0x742   :  { %966 = vadd.xlane.f32.xlu0 %v965_v10 }
 0x7cf   :  { %v967_v13 = vpop.xlane.xlu0 %966 }
 0x7d0   :  { %v975_v14 = vadd.f32 %v1071_v12, %v967_v13 }
 0x7d2   :  { %v976_v15 = vand.u32 2147483647, %v975_v14  ;;  %vm982_vm5 = vcmp.ge.f32.partialorder %v975_v14, 0.0 }
 0x7d4   :  { %v977_v16 = vsub.f32 0.0, %v976_v15 }
 0x7d6   :  { %v978_v17 = vmul.f32 1.442695, %v977_v16 }
 0x7d8   :  { %1344 = vpow2.f32 %v978_v17 }
 0x7e2   :  { %v1345_v18 = vpop.eup %1344 }
 0x7e3   :  { %v980_v19 = vadd.f32 1.0, %v1345_v18 }
 0x7e5   :  { %1346 = vrcp.f32 %v980_v19 }
 0x7ef   :  { %v1347_v20 = vpop.eup %1346 }
 0x7f0   :  { %v983_v21 = vmul.f32 %v1347_v20, %v1345_v18 }
 0x7f2   :  { %v984_v22 = vsel %vm982_vm5, %v1347_v20, %v983_v21 }
 0x7f3   :  { %988 = vperm.xlu0 %1285, %v984_v22  }
 0x872   :  { %v989_v23 = vpop.permute.xlu0 %988 }
 0x873   :  { %v991_v24 = vsel %vm985_vm6, %v989_v23, %v722_v47 }
 0x874   :  { %v992_v25 = vpack.c.bf16 %v991_v24, %v991_v24 }
 0x876   :  { %993 = vst [vmem:[%s1838_s20] sm:$0xf] %v992_v25 }
 0x877   :  { %1002 = vsyncpa [#allocation4], 1 }
 0x878   :  { %1003 = vsyncpa [#allocation6], 1 }

</bundles_post_ra>
